<compile_context>
chip_gen: v6e
topology: v6e:2x2x1
jax: 0.10.0
libtpu: 0.0.40
codegen_flags: <defaults>
</compile_context>

<pallas_src>
import jax
import jax.numpy as jnp
from jax.experimental import pallas as pl
from jax.experimental.pallas import tpu as pltpu


def _identity_kernel(x_ref, o_ref):
    # Pure pass-through: load the VMEM tile and store it unchanged.
    o_ref[...] = x_ref[...]


_LANE_WIDTHS = (2048, 1024, 512, 256, 128)
# ~4 MiB tiles: with double-buffered input + output (4x resident) this stays
# comfortably under v7x's 32 MiB default scoped VMEM; no vmem_limit bump needed.
_TARGET_TILE_BYTES = 4 * 1024 * 1024


@jax.jit
def identity(x: jax.Array) -> jax.Array:
    """Pallas identity: returns `x` unchanged (same shape, dtype, values)."""
    orig_shape = x.shape
    n = x.size

    # True identity: if we cannot lay the data out lane-dense without padding,
    # skip the kernel entirely (returning x is the cheapest correct identity).
    if n == 0 or (n % 128) != 0:
        return x

    # Lane-dense slab [rows, lane]: widest lane width that divides n exactly.
    lane = next(w for w in _LANE_WIDTHS if n % w == 0)
    rows = n // lane
    x2d = x.reshape(rows, lane)

    itemsize = jnp.dtype(x.dtype).itemsize
    if rows <= 8:
        # Tiny input: a single full-array block. The (8,128) divisibility rule
        # is waived when the block shape equals the full array dims.
        tile_rows = rows
        grid = (1,)
    else:
        # Big, sublane-aligned row tiles; cdiv grid masks the ragged tail.
        tile_rows = max(8, (_TARGET_TILE_BYTES // (lane * itemsize)) // 8 * 8)
        tile_rows = min(tile_rows, (rows // 8) * 8)
        grid = (pl.cdiv(rows, tile_rows),)

    out2d = pl.pallas_call(
        _identity_kernel,
        out_shape=jax.ShapeDtypeStruct((rows, lane), x.dtype),
        grid=grid,
        in_specs=[pl.BlockSpec((tile_rows, lane), lambda i: (i, 0))],
        out_specs=pl.BlockSpec((tile_rows, lane), lambda i: (i, 0)),
        # Alias output onto the input buffer: no second HBM allocation for a
        # pure identity; XLA can elide most of the remaining traffic.
        input_output_aliases={0: 0},
        compiler_params=pltpu.CompilerParams(
            dimension_semantics=("parallel",),  # shards row axis across TCs on v7x
        ),
    )(x2d)

    return out2d.reshape(orig_shape)


if __name__ == "__main__":
    key = jax.random.PRNGKey(0)
    # Small NCHW input consistent with a typical conv-style module.
    x = jax.random.normal(key, (2, 4, 16, 16), dtype=jnp.float32)

    y = identity(x)
    jax.block_until_ready(y)

    assert y.shape == x.shape, (y.shape, x.shape)
    assert y.dtype == x.dtype, (y.dtype, x.dtype)
    assert bool(jnp.array_equal(y, x)), "identity output mismatch"

    print("KERNEL_OK")
</pallas_src>

<mosaic_0001>
module attributes {stable_mosaic.version = 11 : i64} {
  func.func @_identity_kernel(%arg0: i32, %arg1: memref<1x2048xf32, #tpu.memory_space<vmem>>, %arg2: memref<1x2048xf32, #tpu.memory_space<vmem>>) attributes {dimension_semantics = [#tpu.dimension_semantics<parallel>], iteration_bounds = array<i64: 1>, scalar_prefetch = 0 : i64, scratch_operands = 0 : i64, tpu.core_type = #tpu.core_type<tc>, window_params = [{transform_indices = @transform_0, window_bounds = array<i64: 1, 2048>}, {transform_indices = @transform_1, window_bounds = array<i64: 1, 2048>}]} {
    %c0 = arith.constant 0 : index
    %c0_0 = arith.constant 0 : index
    %0 = vector.load %arg1[%c0, %c0_0] : memref<1x2048xf32, #tpu.memory_space<vmem>>, vector<1x2048xf32>
    %c0_1 = arith.constant 0 : index
    %c0_2 = arith.constant 0 : index
    %1 = vector.load %arg2[%c0_1, %c0_2] : memref<1x2048xf32, #tpu.memory_space<vmem>>, vector<1x2048xf32>
    tpu.vector_store %arg2[%c0_1, %c0_2], %0 {strides = array<i32>} : memref<1x2048xf32, #tpu.memory_space<vmem>>, vector<1x2048xf32>,
    return
  }
  func.func @transform_0(%arg0: i32) -> (i32, i32) {
    %c0_i32 = arith.constant 0 : i32
    %c0_i32_0 = arith.constant 0 : i32
    return %arg0, %c0_i32 : i32, i32
  }
  func.func @transform_1(%arg0: i32) -> (i32, i32) {
    %c0_i32 = arith.constant 0 : i32
    %c0_i32_0 = arith.constant 0 : i32
    return %arg0, %c0_i32 : i32, i32
  }
}

</mosaic_0001>

<bundles_post_ra>
// kernel: identity.1
= control target key start
LH: loop header
LB: loop body
LE: loop exit
PB: predicated region body
PF: predicated region fallthrough
CT: control target
= control target key end

     0   :  { %s38_s0 = inlined_call_operand.vmem [shape: f32[1,2048], index: 0, kind: input, shape index: {}, may-alias: {0,1}]   ;;  %s39_s1 = inlined_call_operand.vmem [shape: f32[1,2048], index: 1, kind: output, shape index: {}, may-alias: {0,1}]  }
   0x1   :  { %v8_v0 = vld [vmem:[%s38_s0] sm:$0xff]  ;;  %v9_v1 = vld [vmem:[%s38_s0 + $0x8] sm:$0xff] }
   0x2   :  { %10 = vst [vmem:[%s39_s1] sm:$0xff] %v8_v0  ;;  %11 = vst [vmem:[%s39_s1 + $0x8] sm:$0xff] %v9_v1 }

</bundles_post_ra>
